<compile_context>
chip_gen: v7x
topology: tpu7x:2x2x1
jax: 0.10.0
libtpu: 0.0.40
codegen_flags: <defaults>
</compile_context>

<pallas_src>
import functools

import jax
import jax.numpy as jnp
from jax import lax
from jax.experimental import pallas as pl
from jax.experimental.pallas import tpu as pltpu

# Module configuration (mirrors GraphPooling.__init__ arguments).
IN_CHANNELS = 32                     # in_channels
OUT_CHANNELS = 16                    # out_channels (lin_out = Linear(32, 16))
NUM_POOLS = 2                        # pool_type = [MEAN, MAX]
HIDDEN = IN_CHANNELS // NUM_POOLS    # lin = Linear(32, 16), applied per pool
# activation = IDENTITY -> no nonlinearity; bn=False.


def _graph_pooling_kernel(num_graphs, feat, xa_ref, bcol_ref, brow_ref,
                          w_ref, b_ref, out_ref):
    """Fused segment mean/max pooling + folded linear head (one instance).

    xa_ref:   [N, F+1] node features with a trailing ones column (counts)
    bcol_ref: [N, 1] i32 graph id per node (mask orientation for max pool)
    brow_ref: [1, N] i32 graph id per node (MXU-friendly orientation)
    w_ref:    [2F, O] folded+stacked head weight [Wl@Wo_top ; Wl@Wo_bot]
    b_ref:    [1, O]  folded bias
    out_ref:  [B, O]  output
    """
    xa = xa_ref[...].astype(jnp.float32)                         # [N, F+1]
    n = xa.shape[0]

    # ---- mean pool: sums AND counts from a single MXU matmul --------------
    # onehot built directly in [B, N] orientation -> standard (M,K)@(K,N).
    gids_bn = lax.broadcasted_iota(jnp.int32, (num_graphs, n), 0)  # [B, N]
    onehot_bn = (gids_bn == brow_ref[...]).astype(jnp.float32)     # [B, N]
    s = jnp.dot(onehot_bn, xa, preferred_element_type=jnp.float32)  # [B, F+1]
    sums = s[:, :feat]                                             # [B, F]
    counts = s[:, feat:feat + 1]                                   # [B, 1]
    inv_cnt = 1.0 / jnp.maximum(counts, 1.0)                       # exact (tol)
    mean_pool = sums * inv_cnt                                     # [B, F]

    # ---- max pool: one vectorized mask compare + tiny static unroll -------
    # TODO(synk): switch to lax.fori_loop(..., unroll=True) with a VMEM
    # scratch accumulator if num_graphs grows past ~8.
    x = xa[:, :feat]                                               # [N, F]
    masks_nb = bcol_ref[...] == lax.broadcasted_iota(
        jnp.int32, (n, num_graphs), 1)                             # [N, B] bool
    rows = []
    for g in range(num_graphs):
        rows.append(jnp.max(jnp.where(masks_nb[:, g:g + 1], x, -jnp.inf),
                            axis=0, keepdims=True))                # [1, F]
    max_pool = jnp.concatenate(rows, axis=0)                       # [B, F]
    # NOTE: an empty graph yields a -inf max row (same as the pure-JAX /
    # PyG-style reference); nodes with batch id outside [0, B) are dropped.

    # ---- folded head: single K=2F MXU dot ---------------------------------
    pooled = jnp.concatenate([mean_pool, max_pool], axis=1)        # [B, 2F]
    out = jnp.dot(pooled, w_ref[...],
                  preferred_element_type=jnp.float32) + b_ref[...]
    out_ref[...] = out.astype(out_ref.dtype)                       # one dense store


def graph_pooling_forward_batched(x, batch, num_graphs, params):
    """Batched Pallas GraphPooling.forward2: I independent instances.

    x:     [I, N, F] node features
    batch: [I, N]    int graph ids per node
    Returns [I, num_graphs, out_channels].
    num_graphs is a static Python int (baked into the kernel); if batch
    composition varies at runtime, switch to a scalar-prefetch count.
    """
    num_inst, n_nodes, feat = x.shape

    wl, bl, wo, bo = params["wl"], params["bl"], params["wo"], params["bo"]
    hidden = wl.shape[1]
    out_ch = wo.shape[1]
    # Fold lin (per-pool Linear(F, F//2)) and lin_out (Linear(F, O)) and stack
    # the two pool branches into one weight; one-time host/XLA cost since
    # activation is IDENTITY and bn=False.
    wo_top, wo_bot = wo[:hidden, :], wo[hidden:, :]
    w_fused = jnp.concatenate([wl @ wo_top, wl @ wo_bot], axis=0)  # [2F, O]
    b_fused = bl @ wo_top + bl @ wo_bot + bo                       # [1, O]

    # Ones column -> counts come out of the pooling matmul for free.
    xa = jnp.concatenate([x, jnp.ones((num_inst, n_nodes, 1), x.dtype)],
                         axis=-1)                                  # [I, N, F+1]
    bcol = batch.reshape(num_inst, n_nodes, 1).astype(jnp.int32)   # [I, N, 1]
    brow = batch.reshape(num_inst, 1, n_nodes).astype(jnp.int32)   # [I, 1, N]

    out = pl.pallas_call(
        functools.partial(_graph_pooling_kernel, num_graphs, feat),
        out_shape=jax.ShapeDtypeStruct((num_inst, num_graphs, out_ch),
                                       jnp.float32),
        grid=(num_inst,),
        in_specs=[
            pl.BlockSpec((None, n_nodes, feat + 1), lambda i: (i, 0, 0)),
            pl.BlockSpec((None, n_nodes, 1), lambda i: (i, 0, 0)),
            pl.BlockSpec((None, 1, n_nodes), lambda i: (i, 0, 0)),
            pl.BlockSpec((2 * feat, out_ch), lambda i: (0, 0)),
            pl.BlockSpec((1, out_ch), lambda i: (0, 0)),
        ],
        out_specs=pl.BlockSpec((None, num_graphs, out_ch), lambda i: (i, 0, 0)),
        compiler_params=pltpu.CompilerParams(
            dimension_semantics=("parallel",)),
    )(xa, bcol, brow, w_fused, b_fused)
    return out

    # TODO(synk): if N grows large, add a node-axis grid dim ("arbitrary",
    # placed last) with running sum/count/max accumulators in VMEM scratch;
    # with F=32 f32 even v7x's 64 MiB VMEM allows node tiles >= 2048 rows.
    # TODO(synk): output last dim is 16 (<128 lanes) -> masked vst; if store
    # bandwidth ever matters, pack instances along the lane axis instead.


def graph_pooling_forward(x, batch, num_graphs, params):
    """Single-instance Pallas implementation of GraphPooling.forward2."""
    out = graph_pooling_forward_batched(x[None], batch[None], num_graphs,
                                        params)
    return out[0]


# TODO(synk): PoolingTypes.GLOBAL_ATT raises NotImplementedError in the
# reference module and bn is disallowed by `assert not bn`, so neither path
# is implemented here.


def _reference(x, batch, num_graphs, params):
    """Pure-JAX reference (global_mean_pool / global_max_pool + lin + lin_out)."""
    onehot = (batch[:, None] == jnp.arange(num_graphs)[None, :]).astype(
        jnp.float32)                                               # [N, B]
    counts = onehot.sum(axis=0)[:, None]                           # [B, 1]
    ref_mean = (onehot.T @ x) / jnp.maximum(counts, 1.0)           # [B, F]
    ref_max = jnp.max(
        jnp.where(onehot.T[:, :, None] > 0, x[None, :, :], -jnp.inf), axis=1)
    h = jnp.concatenate(
        [ref_mean @ params["wl"] + params["bl"],
         ref_max @ params["wl"] + params["bl"]], axis=1)           # [B, F]
    return h @ params["wo"] + params["bo"]                         # [B, O]


if __name__ == "__main__":
    key = jax.random.PRNGKey(0)
    k1, k2, k3, k4, k5, k6 = jax.random.split(key, 6)

    N = 16                     # total nodes across all graphs in the batch
    B = 2                      # number of graphs
    F = IN_CHANNELS

    # Deterministic synthetic parameters (shapes from the module's __init__).
    params = {
        "wl": 0.1 * jax.random.normal(k2, (F, HIDDEN), dtype=jnp.float32),
        "bl": 0.1 * jax.random.normal(k3, (1, HIDDEN), dtype=jnp.float32),
        "wo": 0.1 * jax.random.normal(k4, (F, OUT_CHANNELS), dtype=jnp.float32),
        "bo": 0.1 * jax.random.normal(k5, (1, OUT_CHANNELS), dtype=jnp.float32),
    }

    # ---- single-instance call (matches the module's forward2 signature) ----
    x = jax.random.normal(k1, (N, F), dtype=jnp.float32)
    batch = jnp.concatenate(
        [jnp.zeros((7,), jnp.int32), jnp.ones((N - 7,), jnp.int32)])

    out = graph_pooling_forward(x, batch, B, params)
    out = jax.block_until_ready(out)
    assert out.shape == (B, OUT_CHANNELS)
    ref_out = _reference(x, batch, B, params)
    assert jnp.allclose(out, ref_out, atol=1e-4, rtol=1e-4), (out, ref_out)

    # ---- multi-instance call (parallel grid axis, one pallas_call) ---------
    I = 3
    xs = jax.random.normal(k6, (I, N, F), dtype=jnp.float32)
    splits = [7, 5, 10]
    batches = jnp.stack([
        jnp.concatenate([jnp.zeros((s,), jnp.int32),
                         jnp.ones((N - s,), jnp.int32)]) for s in splits])
    outs = graph_pooling_forward_batched(xs, batches, B, params)
    outs = jax.block_until_ready(outs)
    assert outs.shape == (I, B, OUT_CHANNELS)
    for i in range(I):
        ref_i = _reference(xs[i], batches[i], B, params)
        assert jnp.allclose(outs[i], ref_i, atol=1e-4, rtol=1e-4), i

    print("KERNEL_OK")
</pallas_src>

<mosaic_0001>
module attributes {stable_mosaic.version = 11 : i64} {
  func.func @_graph_pooling_kernel(%arg0: i32, %arg1: memref<1x16x33xf32, #tpu.memory_space<vmem>>, %arg2: memref<1x16x1xi32, #tpu.memory_space<vmem>>, %arg3: memref<1x1x16xi32, #tpu.memory_space<vmem>>, %arg4: memref<64x16xf32, #tpu.memory_space<vmem>>, %arg5: memref<1x16xf32, #tpu.memory_space<vmem>>, %arg6: memref<1x2x16xf32, #tpu.memory_space<vmem>>) attributes {dimension_semantics = [#tpu.dimension_semantics<parallel>], iteration_bounds = array<i64: 1>, scalar_prefetch = 0 : i64, scratch_operands = 0 : i64, tpu.core_type = #tpu.core_type<tc>, window_params = [{transform_indices = @transform_0, window_bounds = array<i64: 1, 16, 33>}, {transform_indices = @transform_1, window_bounds = array<i64: 1, 16, 1>}, {transform_indices = @transform_2, window_bounds = array<i64: 1, 1, 16>}, {pipeline_mode = #tpu.pipeline_mode<synchronous>, transform_indices = @transform_3, window_bounds = array<i64: 64, 16>}, {pipeline_mode = #tpu.pipeline_mode<synchronous>, transform_indices = @transform_4, window_bounds = array<i64: 1, 16>}, {transform_indices = @transform_5, window_bounds = array<i64: 1, 2, 16>}]} {
    %c0 = arith.constant 0 : index
    %c0_0 = arith.constant 0 : index
    %c0_1 = arith.constant 0 : index
    %0 = vector.load %arg1[%c0, %c0_0, %c0_1] : memref<1x16x33xf32, #tpu.memory_space<vmem>>, vector<1x16x33xf32>
    %1 = vector.shape_cast %0 : vector<1x16x33xf32> to vector<16x33xf32>
    %2 = tpu.iota {dimensions = array<i32: 0>} : vector<2x16xi32>
    %c0_2 = arith.constant 0 : index
    %c0_3 = arith.constant 0 : index
    %c0_4 = arith.constant 0 : index
    %3 = vector.load %arg3[%c0_2, %c0_3, %c0_4] : memref<1x1x16xi32, #tpu.memory_space<vmem>>, vector<1x1x16xi32>
    %4 = vector.shape_cast %3 : vector<1x1x16xi32> to vector<1x16xi32>
    %5 = vector.broadcast %4 : vector<1x16xi32> to vector<2x16xi32>
    %6 = arith.cmpi eq, %2, %5 : vector<2x16xi32>
    %7 = arith.extui %6 : vector<2x16xi1> to vector<2x16xi32>
    %8 = arith.sitofp %7 : vector<2x16xi32> to vector<2x16xf32>
    %cst = arith.constant dense<0.000000e+00> : vector<2x33xf32>
    %9 = tpu.matmul %8, %1, %cst {dimension_numbers = #tpu.dot_dimension_numbers<[1], [0], [0], [1], [0, 0, 1, 1], [], []>} : vector<2x16xf32>, vector<16x33xf32>, vector<2x33xf32> -> vector<2x33xf32>
    %10 = vector.extract_strided_slice %9 {offsets = [0, 0], sizes = [2, 32], strides = [1, 1]} : vector<2x33xf32> to vector<2x32xf32>
    %11 = vector.extract_strided_slice %9 {offsets = [0, 32], sizes = [2, 1], strides = [1, 1]} : vector<2x33xf32> to vector<2x1xf32>
    %cst_5 = arith.constant 1.000000e+00 : f32
    %12 = vector.broadcast %cst_5 : f32 to vector<2x1xf32>
    %13 = arith.maximumf %11, %12 : vector<2x1xf32>
    %cst_6 = arith.constant 1.000000e+00 : f32
    %14 = vector.broadcast %cst_6 : f32 to vector<2x1xf32>
    %15 = arith.divf %14, %13 : vector<2x1xf32>
    %16 = vector.broadcast %15 : vector<2x1xf32> to vector<2x32xf32>
    %17 = arith.mulf %10, %16 : vector<2x32xf32>
    %18 = vector.extract_strided_slice %1 {offsets = [0, 0], sizes = [16, 32], strides = [1, 1]} : vector<16x33xf32> to vector<16x32xf32>
    %c0_7 = arith.constant 0 : index
    %c0_8 = arith.constant 0 : index
    %c0_9 = arith.constant 0 : index
    %19 = vector.load %arg2[%c0_7, %c0_8, %c0_9] : memref<1x16x1xi32, #tpu.memory_space<vmem>>, vector<1x16x1xi32>
    %20 = vector.shape_cast %19 : vector<1x16x1xi32> to vector<16x1xi32>
    %21 = tpu.iota {dimensions = array<i32: 1>} : vector<16x2xi32>
    %22 = vector.broadcast %20 : vector<16x1xi32> to vector<16x2xi32>
    %23 = arith.cmpi eq, %22, %21 : vector<16x2xi32>
    %24 = vector.extract_strided_slice %23 {offsets = [0, 0], sizes = [16, 1], strides = [1, 1]} : vector<16x2xi1> to vector<16x1xi1>
    %cst_10 = arith.constant 0xFF800000 : f32
    %25 = vector.shape_cast %24 : vector<16x1xi1> to vector<16x1xi1>
    %26 = vector.broadcast %25 : vector<16x1xi1> to vector<16x32xi1>
    %27 = vector.broadcast %cst_10 : f32 to vector<16x32xf32>
    %28 = arith.select %26, %18, %27 : vector<16x32xi1>, vector<16x32xf32>
    %cst_11 = arith.constant dense<0xFF800000> : vector<32xf32>
    %29 = vector.multi_reduction <maximumf>, %28, %cst_11 [0] : vector<16x32xf32> to vector<32xf32>
    %30 = vector.shape_cast %29 : vector<32xf32> to vector<1x32xf32>
    %31 = vector.extract_strided_slice %23 {offsets = [0, 1], sizes = [16, 1], strides = [1, 1]} : vector<16x2xi1> to vector<16x1xi1>
    %cst_12 = arith.constant 0xFF800000 : f32
    %32 = vector.shape_cast %31 : vector<16x1xi1> to vector<16x1xi1>
    %33 = vector.broadcast %32 : vector<16x1xi1> to vector<16x32xi1>
    %34 = vector.broadcast %cst_12 : f32 to vector<16x32xf32>
    %35 = arith.select %33, %18, %34 : vector<16x32xi1>, vector<16x32xf32>
    %cst_13 = arith.constant dense<0xFF800000> : vector<32xf32>
    %36 = vector.multi_reduction <maximumf>, %35, %cst_13 [0] : vector<16x32xf32> to vector<32xf32>
    %37 = vector.shape_cast %36 : vector<32xf32> to vector<1x32xf32>
    %38 = tpu.concatenate %30, %37 in 0 : vector<1x32xf32>, vector<1x32xf32> -> vector<2x32xf32>
    %39 = tpu.concatenate %17, %38 in 1 : vector<2x32xf32>, vector<2x32xf32> -> vector<2x64xf32>
    %c0_14 = arith.constant 0 : index
    %c0_15 = arith.constant 0 : index
    %40 = vector.load %arg4[%c0_14, %c0_15] : memref<64x16xf32, #tpu.memory_space<vmem>>, vector<64x16xf32>
    %cst_16 = arith.constant dense<0.000000e+00> : vector<2x16xf32>
    %41 = tpu.matmul %39, %40, %cst_16 {dimension_numbers = #tpu.dot_dimension_numbers<[1], [0], [0], [1], [0, 0, 1, 1], [], []>} : vector<2x64xf32>, vector<64x16xf32>, vector<2x16xf32> -> vector<2x16xf32>
    %c0_17 = arith.constant 0 : index
    %c0_18 = arith.constant 0 : index
    %42 = vector.load %arg5[%c0_17, %c0_18] : memref<1x16xf32, #tpu.memory_space<vmem>>, vector<1x16xf32>
    %43 = vector.broadcast %42 : vector<1x16xf32> to vector<2x16xf32>
    %44 = arith.addf %41, %43 : vector<2x16xf32>
    %c0_19 = arith.constant 0 : index
    %c0_20 = arith.constant 0 : index
    %c0_21 = arith.constant 0 : index
    %45 = vector.load %arg6[%c0_19, %c0_20, %c0_21] : memref<1x2x16xf32, #tpu.memory_space<vmem>>, vector<1x2x16xf32>
    %46 = vector.shape_cast %45 : vector<1x2x16xf32> to vector<2x16xf32>
    %47 = vector.shape_cast %44 : vector<2x16xf32> to vector<1x2x16xf32>
    tpu.vector_store %arg6[%c0_19, %c0_20, %c0_21], %47 {strides = array<i32>} : memref<1x2x16xf32, #tpu.memory_space<vmem>>, vector<1x2x16xf32>,
    return
  }
  func.func @transform_0(%arg0: i32) -> (i32, i32, i32) {
    %c0_i32 = arith.constant 0 : i32
    %c0_i32_0 = arith.constant 0 : i32
    %c0_i32_1 = arith.constant 0 : i32
    return %arg0, %c0_i32, %c0_i32_0 : i32, i32, i32
  }
  func.func @transform_1(%arg0: i32) -> (i32, i32, i32) {
    %c0_i32 = arith.constant 0 : i32
    %c0_i32_0 = arith.constant 0 : i32
    %c0_i32_1 = arith.constant 0 : i32
    return %arg0, %c0_i32, %c0_i32_0 : i32, i32, i32
  }
  func.func @transform_2(%arg0: i32) -> (i32, i32, i32) {
    %c0_i32 = arith.constant 0 : i32
    %c0_i32_0 = arith.constant 0 : i32
    %c0_i32_1 = arith.constant 0 : i32
    return %arg0, %c0_i32, %c0_i32_0 : i32, i32, i32
  }
  func.func @transform_3(%arg0: i32) -> (i32, i32) {
    %c0_i32 = arith.constant 0 : i32
    %c0_i32_0 = arith.constant 0 : i32
    %c0_i32_1 = arith.constant 0 : i32
    return %c0_i32, %c0_i32_0 : i32, i32
  }
  func.func @transform_4(%arg0: i32) -> (i32, i32) {
    %c0_i32 = arith.constant 0 : i32
    %c0_i32_0 = arith.constant 0 : i32
    %c0_i32_1 = arith.constant 0 : i32
    return %c0_i32, %c0_i32_0 : i32, i32
  }
  func.func @transform_5(%arg0: i32) -> (i32, i32, i32) {
    %c0_i32 = arith.constant 0 : i32
    %c0_i32_0 = arith.constant 0 : i32
    %c0_i32_1 = arith.constant 0 : i32
    return %arg0, %c0_i32, %c0_i32_0 : i32, i32, i32
  }
}

</mosaic_0001>

<bundles_post_ra>
// kernel: tpu_custom_call.1
= control target key start
LH: loop header
LB: loop body
LE: loop exit
PB: predicated region body
PF: predicated region fallthrough
CT: control target
= control target key end

     0   :  { %v23_v3 = vlaneseq  ;;  %v378_v4 = vmov 0   ;;  %v379_v5 = vmov 0.0|0.0   ;;  %vm380_vm0 = vmmov 0   ;;  %s485_s0 = inlined_call_operand.vmem [shape: f32[1,16,33], index: 0, kind: input, shape index: {}]   ;;  %s486_s1 = inlined_call_operand.vmem [shape: s32[1,16,1], index: 1, kind: input, shape index: {}]   ;;  %s487_s2 = inlined_call_operand.vmem [shape: s32[1,1,16], index: 2, kind: input, shape index: {}]   ;;  %s488_s3 = inlined_call_operand.vmem [shape: f32[64,16], index: 3, kind: input, shape index: {}]   ;;  %s489_s4 = inlined_call_operand.vmem [shape: f32[1,16], index: 4, kind: input, shape index: {}]   ;;  %s490_s5 = inlined_call_operand.hbm [shape: f32[1,2,16], index: 5, kind: output, shape index: {}]  }
   0x1   :  { %v116_v0 = vld [vmem:[%s486_s1] sm:$0xff]  ;;  %v427_v2 = vld [vmem:[%s485_s0 + $0x8] sm:$0xff]  ;;  %347 = vset.pattern.permute.xlu0 %v378_v4  ;;  %324 = vmatprep.subr.bf16.mxu0 %v379_v5  ;;  %v381_v8 = vmov 0.0  }
   0x2   :  { %v422_v1 = vld [vmem:[%s485_s0] sm:$0xff]  ;;  %121 = vperm.xlu0 %347, %v116_v0   ;;  %302 = vmatprep.mubr.msk.f32.mxu0 %vm380_vm0, %v381_v8  ;;  %v24_v9 = vshrl.u32 %v23_v3, 7 }
   0x3   :  { %v325_v6 = vpack.c.bf16 %v427_v2, %v422_v1  ;;  %v281_v7 = vld [vmem:[%s487_s2] ss:$0 sm:$0xff] }
   0x4   :  { %10 = vsyncpa [#allocation3], 0  ;;  %v117_v10 = vld [vmem:[%s486_s1 + $0x8] sm:$0xff]  ;;  %vm33_vm1 = vcmask 130048   ;;  %348 = vset.pattern.permute.xlu1 %v378_v4  ;;  %vm30_vm2 = vcmp.eq.s32.totalorder %v24_v9, %v281_v7  ;;  %327 = vmatprep.subr.bf16.mxu1 %v379_v5  ;;  %v382_v12 = vmov 1   ;;  %v119_v13 = vand.u32 127, %v23_v3 }
   0x5   :  { %326 = vmatpush3.bf16.msra.mxu0 %v325_v6  ;;  %321 = vmatprep.mubr.msk.f32.mxu1 %vm380_vm0, %v381_v8  ;;  %v282_v11 = vsel %vm30_vm2, 1.0, %v381_v8  ;;  %v383_v18 = vmov 32   ;;  %v176_v23 = vld [vmem:[%s488_s3] sm:$0xff]  ;;  %v177_v24 = vld [vmem:[%s488_s3 + $0x8] sm:$0xff]  ;;  %v178_v25 = vld [vmem:[%s488_s3 + $0x10] sm:$0xff]  ;;  %vm140_vm6 = vcmask 261120  }
   0x6   :  { %124 = vperm.xlu0 %347, %v117_v10   ;;  %v328_v26 = vpack.c.bf16 %v177_v24, %v176_v23  ;;  %v179_v27 = vld [vmem:[%s488_s3 + $0x18] sm:$0xff]  ;;  %v180_v29 = vld [vmem:[%s488_s3 + $0x20] sm:$0xff]  ;;  %v181_v30 = vld [vmem:[%s488_s3 + $0x28] sm:$0xff]  ;;  %vm169_vm10 = vcmask 1040384   ;;  %vm191_vm11 = vcmask 523264   ;;  %s385_s18 = smov [#allocation2]  }
   0x7   :  { %v331_v28 = vpack.c.bf16 %v179_v27, %v178_v25  ;;  %v334_v31 = vpack.c.bf16 %v181_v30, %v180_v29  ;;  %v182_v32 = vld [vmem:[%s488_s3 + $0x30] sm:$0xff]  ;;  %v183_v33 = vld [vmem:[%s488_s3 + $0x38] sm:$0xff]  ;;  %s384_s3 = smov 32   ;;  %s273_s19 = sshll.u32 %s385_s18, 4  ;;  %vm265_vm12 = vcmask 123904   ;;  %s274_s19 = int_to_ptr.vmem [resolvable:$true] %s273_s19 }
   0x8   :  { %303 = vmatmul.mubr.msk.f32.vlgmr.msra.gmra.mrb[0].mxu0 %vm33_vm1, %v282_v11  ;;  %329 = vmatpush3.bf16.msra.mxu1 %v328_v26  ;;  %v337_v34 = vpack.c.bf16 %v183_v33, %v182_v32  ;;  %s354_s20 = scalar_lea.vmem %s274_s19, 32  ;;  %p359_p1 = scmp.lt.s32.totalorder %s274_s19, %s274_s19 }
   0x9   :  { %330 = vmatprep.subr.bf16.mxu1 %v379_v5  ;;  %p355_p0 = scmp.ne.s32.totalorder %s274_s19, %s354_s20  ;;  %p360_p2 = scmp.lt.s32.totalorder %s354_s20, %s354_s20 }
   0xa   :  { %349 = vset.pattern.permute.xlu0 %v382_v12 }
   0xb   :  { %p361_p3 = por %p360_p2, %p359_p1 }
   0xc   :  { %332 = vmatpush3.bf16.msra.mxu1 %v331_v28 }
   0xd   :  { %333 = vmatprep.subr.bf16.mxu1 %v379_v5  ;;  %p362_p4 = pnand %p361_p3, %p355_p0 }
  0x10   :  { %335 = vmatpush3.bf16.msra.mxu1 %v334_v31 }
  0x11   :  { %336 = vmatprep.subr.bf16.mxu1 %v379_v5 }
  0x14   :  { %338 = vmatpush3.bf16.msra.mxu1 %v337_v34 }
  0x81   :  { %v122_v14 = vpop.permute.xlu0 %121 }
  0x82   :  { %vm126_vm3 = vcmp.eq.s32.totalorder %v122_v14, %v119_v13 }
  0x83   :  { %v128_v15 = vsel %vm126_vm3, 1, %v378_v4 }
  0x84   :  { %151 = vperm.xlu0 %349, %v128_v15   ;;  %131 = vperm.xlu1 %348, %v128_v15  }
  0x85   :  { %v125_v16 = vpop.permute.xlu0 %124 }
  0x86   :  { %vm127_vm4 = vcmp.eq.s32.totalorder %v125_v16, %v119_v13 }
  0x87   :  { %v129_v17 = vsel %vm127_vm4, 1, %v378_v4 }
  0x88   :  { %134 = vperm.xlu1 %348, %v129_v17  }
  0x8c   :  { %350 = vset.pattern.permute.xlu1 %v382_v12 }
  0x8d   :  { %154 = vperm.xlu1 %350, %v129_v17  }
  0x91   :  { %351 = vset.pattern.permute.xlu1 %v383_v18 }
  0xdb   :  { %v103_v19 = vpop.f32.mrb[0].mxu0 }
  0xdc   :  { %v107_v20 = vmax.f32 %v103_v19, 1.0  ;;  %v304_v21 = vpop.f32.mrb[1].mxu0 }
  0xde   :  { %352 = vrcp.f32 %v107_v20 }
  0xe8   :  { %v353_v22 = vpop.eup %352 }
  0xe9   :  { %112 = vperm.xlu1 %351, %v353_v22  }
 0x103   :  { %v132_v35 = vpop.permute.xlu1 %131  ;;  %v152_v36 = vpop.permute.xlu0 %151 }
 0x104   :  { %vm136_vm5 = vcmp.eq.s32.totalorder %v132_v35, 1  ;;  %vm156_vm8 = vcmp.eq.s32.totalorder %v152_v36, 1 }
 0x105   :  { %v138_v37 = vsel %vm136_vm5, %v422_v1, -inf  ;;  %v158_v43 = vsel %vm156_vm8, %v422_v1, -inf }
 0x106   :  { %v141_v40 = vsel %vm140_vm6, %v138_v37, -inf  ;;  %v160_v47 = vsel %vm140_vm6, %v158_v43, -inf }
 0x107   :  { %v135_v38 = vpop.permute.xlu1 %134 }
 0x108   :  { %vm137_vm7 = vcmp.eq.s32.totalorder %v135_v38, 1 }
 0x109   :  { %v139_v39 = vsel %vm137_vm7, %v427_v2, -inf }
 0x10a   :  { %v142_v41 = vsel %vm140_vm6, %v139_v39, -inf }
 0x10b   :  { %v143_v42 = vmax.f32 %v141_v40, %v142_v41 }
 0x10c   :  { %v155_v44 = vpop.permute.xlu1 %154 }
 0x10d   :  { %v144_v45 = vrot.slane %v143_v42, 4  ;;  %vm157_vm9 = vcmp.eq.s32.totalorder %v155_v44, 1 }
 0x10e   :  { %v159_v46 = vsel %vm157_vm9, %v427_v2, -inf  ;;  %v284_v2 = vld [vmem:[%s489_s4] ss:$0 sm:$0xff] }
 0x10f   :  { %v145_v48 = vmax.f32 %v143_v42, %v144_v45  ;;  %v161_v49 = vsel %vm140_vm6, %v159_v46, -inf }
 0x110   :  { %v162_v50 = vmax.f32 %v160_v47, %v161_v49 }
 0x111   :  { %v146_v51 = vrot.slane %v145_v48, 2 }
 0x112   :  { %v163_v52 = vrot.slane %v162_v50, 4 }
 0x113   :  { %v147_v53 = vmax.f32 %v145_v48, %v146_v51 }
 0x114   :  { %v164_v54 = vmax.f32 %v162_v50, %v163_v52 }
 0x115   :  { %v148_v57 = vrot.slane %v147_v53, 1 }
 0x116   :  { %v165_v55 = vrot.slane %v164_v54, 2 }
 0x117   :  { %v149_v59 = vmax.f32 %v147_v53, %v148_v57 }
 0x118   :  { %v166_v56 = vmax.f32 %v164_v54, %v165_v55 }
 0x11a   :  { %v167_v58 = vrot.slane %v166_v56, 1 }
 0x11c   :  { %v168_v60 = vmax.f32 %v166_v56, %v167_v58 }
 0x11e   :  { %v170_v61 = vsel %vm169_vm10, %v149_v59, %v168_v60 }
 0x11f   :  { %172 = vrot.lane.b32.xlu0 %v170_v61, %s384_s3 }
 0x168   :  { %v113_v62 = vpop.permute.xlu1 %112 }
 0x169   :  { %v115_v63 = vmul.f32 %v113_v62, %v103_v19 }
 0x191   :  { %v173_v0 = vpop.permute.xlu0 %172 }
 0x192   :  { %v175_v1 = vsel %vm140_vm6, %v115_v63, %v173_v0 }
 0x193   :  { %322 = vmatmul.mubr.msk.f32.vlgmr.msra.gmra.mrb[0].mxu1 %vm191_vm11, %v175_v1 }
 0x266   :  { %v261_v3 = vpop.f32.mrb[0].mxu1 }
 0x267   :  { %v262_v4 = vadd.f32 %v284_v2, %v261_v3  ;;  %v323_v5 = vpop.f32.mrb[1].mxu1 }
 0x269   :  { %266 = vst.msk [vmem:[#allocation2] sm:$0x3] %vm265_vm12, %v262_v4 }
 0x26a   :  { %365 = shalt.err (!%p362_p4)
}
 0x26b   :  { %s366_s23 = scalar_lea.hbm %s490_s5, 32 }
 0x26c   :  { %p367_p5 = scmp.ne.s32.totalorder %s490_s5, %s366_s23  ;;  %p370_p6 = scmp.lt.u32.totalorder %s366_s23, %s490_s5 }
 0x26e   :  { %p372_p7 = pnand %p370_p6, %p367_p5 }
 0x270   :  { %375 = shalt.err (!%p372_p7)
}
 0x271   :  { %276 = dma.vmem_to_hbm [thread:$0]  %s274_s19, 32, %s490_s5, [#allocation3]  }
 0x272   :  { %376 = dma.done.wait [#allocation3], 32  }
 0x273   :  { %377 = vsyncadd [#allocation3], 4294967264 }
 0x274   :  { %280 = vsyncpa [#allocation3], 1 }

</bundles_post_ra>
